<compile_context>
chip_gen: v5e
topology: v5e:2x2
jax: 0.10.0
libtpu: 0.0.40
codegen_flags: <defaults>
</compile_context>

<pallas_src>
import jax
import jax.numpy as jnp
from jax import lax
from jax.experimental import pallas as pl
from jax.experimental.pallas import tpu as pltpu


def _landmark_head_kernel(x_ref, w_ref, b_ref, o_ref):
    # x_ref: (Cin, T_HW)   -- channels-major block of one image's pixels
    # w_ref: (Cout, Cin)   -- conv1x1 weight, PyTorch layout (VMEM resident)
    # b_ref: (Cout, 1)     -- bias (f32, VMEM resident)
    # o_ref: (Cout, T_HW)  -- channel-major output block (lane-dense stores)
    acc = lax.dot_general(
        w_ref[...], x_ref[...],
        dimension_numbers=(((1,), (0,)), ((), ())),   # (Cout,Cin)@(Cin,T_HW)
        preferred_element_type=jnp.float32)
    o_ref[...] = (acc + b_ref[...]).astype(o_ref.dtype)


def _pick_hw_tile(hw, cin, cout, itemsize,
                  vmem_budget=24 * 1024 * 1024, cap=8192):
    """Spatial tile (lane dim of both the x and out blocks).

    Largest multiple of 128 such that the double-buffered x block plus the
    double-buffered (sublane-padded) output block fit in `vmem_budget`.
    Full-extent blocks are exempt from the 128-divisibility rule, so small /
    odd HW just uses the whole spatial dim.
    """
    cout_pad = ((cout + 7) // 8) * 8
    per_col = 2 * (cin + cout_pad) * itemsize        # both blocks, x2 buffers
    t = min(vmem_budget // max(per_col, 1), cap)
    if t >= hw:
        return hw                                    # single full-extent tile
    return max((t // 128) * 128, 128)                # partial last tile is clipped


def landmark_head_forward(x_nchw, weight, bias, num_anchors=3):
    """x_nchw: (N, Cin, H, W); weight: (Cout, Cin) (PyTorch conv1x1 kernel with
    the trailing 1x1 dims squeezed); bias: (Cout,).
    Returns (N, H*W*num_anchors, 10), matching LandmarkHead.forward."""
    N, Cin, H, W = x_nchw.shape
    Cout = weight.shape[0]
    assert Cout == num_anchors * 10

    HW = H * W
    # Metadata-only reshape: NCHW is already contiguous as (N, Cin, HW).
    x3d = x_nchw.reshape(N, Cin, HW)
    w2d = weight.astype(x_nchw.dtype)                # (Cout, Cin), no transpose
    b2d = bias.reshape(Cout, 1).astype(jnp.float32)

    itemsize = jnp.dtype(x_nchw.dtype).itemsize
    t_hw = _pick_hw_tile(HW, Cin, Cout, itemsize)
    num_hw_tiles = pl.cdiv(HW, t_hw)
    # Spatial tiles first so megacore (v7x) splits spatial work even at N=1.
    grid = (num_hw_tiles, N)

    cost = pl.CostEstimate(
        flops=2 * N * HW * Cin * Cout,
        transcendentals=0,
        bytes_accessed=(x3d.size * itemsize
                        + w2d.size * itemsize
                        + b2d.size * 4
                        + N * HW * Cout * itemsize))

    out_cmaj = pl.pallas_call(
        _landmark_head_kernel,
        out_shape=jax.ShapeDtypeStruct((N, Cout, HW), x_nchw.dtype),
        grid_spec=pltpu.PrefetchScalarGridSpec(
            num_scalar_prefetch=0,
            grid=grid,
            in_specs=[
                # x: one image (batch dim squeezed), all channels, one spatial tile.
                pl.BlockSpec((None, Cin, t_hw), lambda j, n: (n, 0, j)),
                # Weight / bias stay VMEM resident across the whole grid.
                pl.BlockSpec((Cout, Cin), lambda j, n: (0, 0)),
                pl.BlockSpec((Cout, 1), lambda j, n: (0, 0)),
            ],
            # Channel-major output block: lane dim = t_hw -> unmasked, dense stores.
            out_specs=pl.BlockSpec((None, Cout, t_hw), lambda j, n: (n, 0, j)),
        ),
        compiler_params=pltpu.CompilerParams(
            dimension_semantics=("parallel", "parallel"),
            vmem_limit_bytes=32 * 1024 * 1024),
        cost_estimate=cost,
    )(x3d, w2d, b2d)

    # (N, Cout, HW) -> (N, HW, Cout) -> (N, HW*A, 10).  This XLA transpose
    # touches only the output (Cout/Cin of x's bytes); the row-major reshape is
    # identical to PyTorch's permute(0,2,3,1).contiguous().reshape(N, -1, 10).
    out_nhwc = jnp.transpose(out_cmaj, (0, 2, 1))
    return out_nhwc.reshape(N, HW * num_anchors, 10)


if __name__ == "__main__":
    # Small shapes consistent with the module (inchannels scaled down).
    N, Cin, H, W = 2, 32, 16, 16
    num_anchors = 3
    Cout = num_anchors * 10

    key = jax.random.PRNGKey(0)
    kx, kw, kb = jax.random.split(key, 3)
    x = jax.random.normal(kx, (N, Cin, H, W), dtype=jnp.float32)
    # Deterministic synthetic conv1x1 parameters (shape from nn.Conv2d).
    weight = jax.random.normal(kw, (Cout, Cin), dtype=jnp.float32) * 0.05
    bias = jax.random.normal(kb, (Cout,), dtype=jnp.float32) * 0.05

    out = landmark_head_forward(x, weight, bias, num_anchors)
    out = jax.block_until_ready(out)

    # Sanity check against a pure-JAX reference of the same forward pass.
    ref = jnp.einsum("nchw,oc->nhwo", x, weight) + bias
    ref = ref.reshape(N, H * W * num_anchors, 10)
    assert out.shape == (N, H * W * num_anchors, 10)
    assert jnp.allclose(out, ref, atol=2e-4, rtol=2e-4)

    print("KERNEL_OK")
</pallas_src>

<mosaic_0001>
module attributes {stable_mosaic.version = 11 : i64} {
  func.func @_landmark_head_kernel(%arg0: i32, %arg1: i32, %arg2: memref<1x32x256xf32, #tpu.memory_space<vmem>>, %arg3: memref<30x32xf32, #tpu.memory_space<vmem>>, %arg4: memref<30x1xf32, #tpu.memory_space<vmem>>, %arg5: memref<1x30x256xf32, #tpu.memory_space<vmem>>) attributes {dimension_semantics = [#tpu.dimension_semantics<parallel>, #tpu.dimension_semantics<parallel>], iteration_bounds = array<i64: 1, 2>, scalar_prefetch = 0 : i64, scratch_operands = 0 : i64, tpu.core_type = #tpu.core_type<tc>, window_params = [{transform_indices = @transform_0, window_bounds = array<i64: 1, 32, 256>}, {pipeline_mode = #tpu.pipeline_mode<synchronous>, transform_indices = @transform_1, window_bounds = array<i64: 30, 32>}, {pipeline_mode = #tpu.pipeline_mode<synchronous>, transform_indices = @transform_2, window_bounds = array<i64: 30, 1>}, {transform_indices = @transform_3, window_bounds = array<i64: 1, 30, 256>}]} {
    %c0 = arith.constant 0 : index
    %c0_0 = arith.constant 0 : index
    %0 = vector.load %arg3[%c0, %c0_0] : memref<30x32xf32, #tpu.memory_space<vmem>>, vector<30x32xf32>
    %c0_1 = arith.constant 0 : index
    %c0_2 = arith.constant 0 : index
    %c0_3 = arith.constant 0 : index
    %1 = vector.load %arg2[%c0_1, %c0_2, %c0_3] : memref<1x32x256xf32, #tpu.memory_space<vmem>>, vector<1x32x256xf32>
    %2 = vector.shape_cast %1 : vector<1x32x256xf32> to vector<32x256xf32>
    %cst = arith.constant dense<0.000000e+00> : vector<30x256xf32>
    %3 = tpu.matmul %0, %2, %cst {dimension_numbers = #tpu.dot_dimension_numbers<[1], [0], [0], [1], [0, 0, 1, 1], [], []>} : vector<30x32xf32>, vector<32x256xf32>, vector<30x256xf32> -> vector<30x256xf32>
    %c0_4 = arith.constant 0 : index
    %c0_5 = arith.constant 0 : index
    %4 = vector.load %arg4[%c0_4, %c0_5] : memref<30x1xf32, #tpu.memory_space<vmem>>, vector<30x1xf32>
    %5 = vector.broadcast %4 : vector<30x1xf32> to vector<30x256xf32>
    %6 = arith.addf %3, %5 : vector<30x256xf32>
    %c0_6 = arith.constant 0 : index
    %c0_7 = arith.constant 0 : index
    %c0_8 = arith.constant 0 : index
    %7 = vector.load %arg5[%c0_6, %c0_7, %c0_8] : memref<1x30x256xf32, #tpu.memory_space<vmem>>, vector<1x30x256xf32>
    %8 = vector.shape_cast %7 : vector<1x30x256xf32> to vector<30x256xf32>
    %9 = vector.shape_cast %6 : vector<30x256xf32> to vector<1x30x256xf32>
    tpu.vector_store %arg5[%c0_6, %c0_7, %c0_8], %9 {strides = array<i32>} : memref<1x30x256xf32, #tpu.memory_space<vmem>>, vector<1x30x256xf32>,
    return
  }
  func.func @transform_0(%arg0: i32, %arg1: i32) -> (i32, i32, i32) {
    %c0_i32 = arith.constant 0 : i32
    %c0_i32_0 = arith.constant 0 : i32
    return %arg1, %c0_i32, %arg0 : i32, i32, i32
  }
  func.func @transform_1(%arg0: i32, %arg1: i32) -> (i32, i32) {
    %c0_i32 = arith.constant 0 : i32
    %c0_i32_0 = arith.constant 0 : i32
    %c0_i32_1 = arith.constant 0 : i32
    return %c0_i32, %c0_i32_0 : i32, i32
  }
  func.func @transform_2(%arg0: i32, %arg1: i32) -> (i32, i32) {
    %c0_i32 = arith.constant 0 : i32
    %c0_i32_0 = arith.constant 0 : i32
    %c0_i32_1 = arith.constant 0 : i32
    return %c0_i32, %c0_i32_0 : i32, i32
  }
  func.func @transform_3(%arg0: i32, %arg1: i32) -> (i32, i32, i32) {
    %c0_i32 = arith.constant 0 : i32
    %c0_i32_0 = arith.constant 0 : i32
    return %arg1, %c0_i32, %arg0 : i32, i32, i32
  }
}

</mosaic_0001>

<bundles_post_ra>
// kernel: tpu_custom_call.1
= control target key start
LH: loop header
LB: loop body
LE: loop exit
PB: predicated region body
PF: predicated region fallthrough
CT: control target
= control target key end

     0   :  { %8 = vsyncpa [#allocation3], 0  ;;  %s747_s0 = inlined_call_operand.hbm [shape: f32[2,32,256], index: 0, kind: input, shape index: {}]   ;;  %s748_s1 = inlined_call_operand.vmem [shape: f32[30,32], index: 1, kind: input, shape index: {}]   ;;  %s749_s2 = inlined_call_operand.vmem [shape: f32[30,1], index: 2, kind: input, shape index: {}]   ;;  %s750_s3 = inlined_call_operand.vmem [shape: f32[2,30,256], index: 3, kind: output, shape index: {}]  }
   0x1   :  { %10 = vsyncpa [#allocation3 + $0x1], 0  ;;  %s627_s12 = smov 0   ;;  %s629_s13 = smov 0  }
   0x2   :  { %s631_s14 = smov 0   ;;  %s633_s15 = smov 0  }
   0x3   :  { %s635_s16 = smov 0   ;;  %s637_s17 = smov 0  }
   0x4 LB: > { %s431_s18 = sadd.s32 4294967295, %s602_s17   ;;  %s25_s19 = sadd.s32 1, %s598_s16  ;;  %s602_s17 = sphi %s637_s17, %s16_s17   ;;  %s598_s16 = sphi %s635_s16, %s757_s16   ;;  %s594_s15 = sphi %s633_s15, %s756_s15   ;;  %s590_s14 = sphi %s631_s14, %s755_s14   ;;  %s586_s13 = sphi %s629_s13, %s754_s13   ;;  %s582_s12 = sphi %s627_s12, %s753_s12  }
   0x5   : > { %p26_p0 = scmp.ge.s32.totalorder %s25_s19, 2  ;;  %s37_s20 = sadd.s32 1, %s590_s14 }
   0x6   : > { %p44_p1 = scmp.ne.s32.totalorder %s590_s14, %s586_s13  ;;  %p45_p2 = scmp.eq.s32.totalorder %s602_s17, 0 }
   0x7   : > { %s759_s19 = smov (%p26_p0, %s25_s19), 0  ;;  %p50_p4 = scmp.ne.s32.totalorder %s586_s13, %s582_s12 }
   0x8   : > { %p663_p3 = por %p45_p2, %p44_p1  ;;  %s32_s22 = ssub.s32 %s598_s16, %s759_s19 }
   0x9   : > { %p51_p5 = scmp.eq.s32.totalorder %s431_s18, 0  ;;  %p35_p6 = scmp.eq.s32.totalorder %s32_s22, 0 }
   0xa   : > { %p468_p8 = scmp.lt.s32.totalorder %s602_s17, 2  ;;  %s150_s25 = sand.u32 1, %s590_s14  }
   0xb   : > { %p670_p7 = por %p51_p5, %p50_p4  ;;  %s452_s26 = sshll.u32 %s598_s16, 6 }
   0xc   : > { %s676_s24 = scalar_select %p35_p6, %s590_s14, %s37_s20  }
   0xd   : > { %s435_s27 = sshll.u32 %s150_s25, 6  ;;  %s161_s30 = scalar_lea.hbm %s747_s0, %s452_s26 }
   0xe   : > { %s162_s4 = sshll.u32 %s161_s30, 4  ;;  %s154_s5 = scalar_lea.vmem [#allocation2], %s435_s27  ;;  %s163_s4 = int_to_ptr.hbm [resolvable:$true] %s162_s4 }
   0xf   : > { %s164_s6 = sshll.u32 %s154_s5, 4  ;;  %p465_p9 = pnand %p468_p8, %p663_p3  ;;  %s165_s6 = int_to_ptr.vmem [resolvable:$true] %s164_s6 }
  0x10   : > { %p438_p10 = scmp.ge.s32.totalorder %s602_s17, 1  ;;  %p172_p11 = scmp.lt.s32.totalorder %s602_s17, 3 }
  0x11   : > { %s151_s7 = scalar_lea.sflag [#allocation3], %s150_s25  ;;  %s604_s8 = smov 256  }
  0x12   : > { %s605_s9 = smov 16   ;;  %p173_p12 = pnand %p438_p10, %p172_p11 }
  0x13   : > { %467 = dma.hbm_to_vmem [thread:$0]  (!%p465_p9), %s163_s4, 1024, %s165_s6, %s151_s7, %s604_s8, %s604_s8, %s605_s9  }
  0x14   : > { %176 = sbr.rel (%p173_p12) target bundleno = 180 (0xb4), region = 32  ;;  %s178_s10 = sand.u32 (!%p173_p12), 1, %s586_s13  }
  0x15   : > { %s439_s11 = sshll.u32 (!%p173_p12), %s178_s10, 6  ;;  %s179_s12 = scalar_lea.sflag (!%p173_p12), [#allocation3], %s178_s10 }
  0x16   : > { %s182_s18 = scalar_lea.vmem (!%p173_p12), [#allocation2], %s439_s11 }
  0x19   : > { %577 = dma.done.wait (%p670_p7), %s179_s12, 1024  }
  0x1a   : > { %579 = vsyncadd (%p670_p7), %s179_s12, 4294966272  ;;  %v606_v0 = vmov 0   ;;  %v231_v1 = vld [vmem:[%s182_s18 + $0x30] sm:$0xff]  ;;  %v232_v2 = vld [vmem:[%s182_s18 + $0x38] sm:$0xff]  ;;  %vm257_vm0 = vcmask 261120   ;;  %p212_p13 = scmp.lt.s32.totalorder %s594_s15, 1 }
  0x1b   : > { %521 = vset.pattern.permute.xlu1 %v606_v0  ;;  %520 = vset.pattern.permute.xlu0 %v606_v0  ;;  %v229_v3 = vld [vmem:[%s182_s18 + $0x20] sm:$0xff]  ;;  %v230_v4 = vld [vmem:[%s182_s18 + $0x28] sm:$0xff]  ;;  %v227_v5 = vld [vmem:[%s182_s18 + $0x10] sm:$0xff] }
  0x1c   : > { %282 = vmatpush.msra.mxu0 %v231_v1  ;;  %454 = vmatpush.msra.mxu2 %v231_v1  ;;  %v228_v6 = vld [vmem:[%s182_s18 + $0x18] sm:$0xff]  ;;  %v225_v7 = vld [vmem:[%s182_s18] sm:$0xff]  ;;  %v226_v8 = vld [vmem:[%s182_s18 + $0x8] sm:$0xff]  ;;  %s761_s15 = smov (!%p212_p13, %s594_s15), 1 }
  0x1d   : > { %311 = vmatpush.msra.mxu1 %v232_v2  ;;  %458 = vmatpush.msra.mxu3 %v232_v2  ;;  %v221_v9 = vld [vmem:[%s748_s1] sm:$0xff]  ;;  %v223_v10 = vld [vmem:[%s748_s1 + $0x10] sm:$0xff]  ;;  %v222_v13 = vld [vmem:[%s748_s1 + $0x8] sm:$0xff]  ;;  %s453_s10 = sshll.u32 %s761_s15, 6 }
  0x1e   : > { %283 = vmatpush.msra.mxu0 %v229_v3  ;;  %455 = vmatpush.msra.mxu2 %v229_v3  ;;  %v235_v11 = vld [vmem:[%s749_s2 + $0x10] sm:$0xff]  ;;  %v233_v12 = vld [vmem:[%s749_s2] sm:$0xff]  ;;  %v224_v14 = vld [vmem:[%s748_s1 + $0x18] sm:$0x3f]  ;;  %s219_s18 = scalar_lea.vmem %s750_s3, %s453_s10 }
  0x1f   : > { %312 = vmatpush.msra.mxu1 %v230_v4  ;;  %459 = vmatpush.msra.mxu3 %v230_v4  ;;  %v236_v15 = vld [vmem:[%s749_s2 + $0x18] sm:$0x3f]  ;;  %v234_v16 = vld [vmem:[%s749_s2 + $0x8] sm:$0xff] }
  0x20   : > { %284 = vmatpush.msra.mxu0 %v227_v5  ;;  %456 = vmatpush.msra.mxu2 %v227_v5 }
  0x21   : > { %313 = vmatpush.msra.mxu1 %v228_v6  ;;  %460 = vmatpush.msra.mxu3 %v228_v6 }
  0x22   : > { %285 = vmatpush.msra.mxu0 %v225_v7  ;;  %457 = vmatpush.msra.mxu2 %v225_v7 }
  0x23   : > { %314 = vmatpush.msra.mxu1 %v226_v8  ;;  %461 = vmatpush.msra.mxu3 %v226_v8 }
  0x24   : > { %442 = vmatmul.msk.f32.vlgmr.msra.gmra.mxu0 %vm257_vm0, %v221_v9  ;;  %444 = vmatmul.msk.f32.vlgmr.msra.gmra.mxu2 %vm257_vm0, %v223_v10 }
  0x25   : > { %446 = vmatmul.msk.f32.vlgmr.msra.gmra.mxu1 %vm257_vm0, %v221_v9  ;;  %448 = vmatmul.msk.f32.vlgmr.msra.gmra.mxu3 %vm257_vm0, %v223_v10 }
  0x26   : > { %249 = vperm.xlu1 %521, %v235_v11   ;;  %239 = vperm.xlu0 %520, %v233_v12  }
  0x2c   : > { %443 = vmatmul.msk.f32.gmra.mxu0 %vm257_vm0, %v222_v13  ;;  %445 = vmatmul.msk.f32.gmra.mxu2 %vm257_vm0, %v224_v14 }
  0x2d   : > { %447 = vmatmul.msk.f32.gmra.mxu1 %vm257_vm0, %v222_v13  ;;  %449 = vmatmul.msk.f32.gmra.mxu3 %vm257_vm0, %v224_v14 }
  0x2e   : > { %254 = vperm.xlu1 %521, %v236_v15   ;;  %244 = vperm.xlu0 %520, %v234_v16  }
  0x98   : > { %v240_v17 = vpop.permute.xlu0 %239  ;;  %v250_v22 = vpop.permute.xlu1 %249 }
  0xa0   : > { %v245_v26 = vpop.permute.xlu0 %244  ;;  %v255_v32 = vpop.permute.xlu1 %254 }
  0xa1   : > { %v287_v18 = vpop.f32.mrf.mxu0 }
  0xa2   : > { %v288_v19 = vadd.f32 %v287_v18, %v240_v17  ;;  %v316_v20 = vpop.f32.mrf.mxu1 }
  0xa3   : > { %v317_v21 = vadd.f32 %v316_v20, %v240_v17 }
  0xa4   : > { %328 = vst [vmem:[%s219_s18] sm:$0xff] %v288_v19 }
  0xa5   : > { %329 = vst [vmem:[%s219_s18 + $0x8] sm:$0xff] %v317_v21 }
  0xa7   : > { %v293_v23 = vpop.f32.mrf.mxu2 }
  0xa8   : > { %v294_v24 = vadd.f32 %v293_v23, %v250_v22  ;;  %v322_v25 = vpop.f32.mrf.mxu3 }
  0xa9   : > { %v323_v27 = vadd.f32 %v322_v25, %v250_v22  ;;  %v290_v28 = vpop.f32.mrf.mxu0 }
  0xaa   : > { %332 = vst [vmem:[%s219_s18 + $0x20] sm:$0xff] %v294_v24  ;;  %v291_v29 = vadd.f32 %v290_v28, %v245_v26  ;;  %v319_v30 = vpop.f32.mrf.mxu1 }
  0xab   : > { %333 = vst [vmem:[%s219_s18 + $0x28] sm:$0xff] %v323_v27  ;;  %v320_v31 = vadd.f32 %v319_v30, %v245_v26 }
  0xac   : > { %330 = vst [vmem:[%s219_s18 + $0x10] sm:$0xff] %v291_v29 }
  0xad   : > { %331 = vst [vmem:[%s219_s18 + $0x18] sm:$0xff] %v320_v31 }
  0xaf   : > { %v296_v33 = vpop.f32.mrf.mxu2 }
  0xb0   : > { %v297_v34 = vadd.f32 %v296_v33, %v255_v32  ;;  %v325_v35 = vpop.f32.mrf.mxu3 }
  0xb1   : > { %v326_v36 = vadd.f32 %v325_v35, %v255_v32 }
  0xb2   : > { %334 = vst [vmem:[%s219_s18 + $0x30] sm:$0x3f] %v297_v34 }
  0xb3   : > { %335 = vst [vmem:[%s219_s18 + $0x38] sm:$0x3f] %v326_v36 }
  0xb4 PF: > { %s16_s17 = sadd.s32 1, %s602_s17   ;;  %s753_s12 = smov %s586_s13 }
  0xb5   : > { %p13_p0 = scmp.ge.s32.totalorder %s16_s17, 4   ;;  %s754_s13 = smov %s590_s14 }
  0xb6   : > { %s755_s14 = smov %s676_s24  ;;  %s756_s15 = smov %s598_s16 }
  0xb7   : > { %s757_s16 = smov %s759_s19  ;;  %15 = sbr.rel (!%p13_p0) target bundleno = 4 (0x4), region = 72 }
  0xbc   :  { %366 = vsyncpa [#allocation3], 1 }
  0xbd   :  { %368 = vsyncpa [#allocation3 + $0x1], 1 }

</bundles_post_ra>
